<compile_context>
chip_gen: v6e
topology: v6e:2x2x1
jax: 0.10.0
libtpu: 0.0.40
codegen_flags: <defaults>
</compile_context>

<pallas_src>
import functools

import jax
import jax.numpy as jnp
from jax.experimental import pallas as pl
from jax.experimental.pallas import tpu as pltpu


def _round_up(x, m):
    return (x + m - 1) // m * m


def _treenode_level_kernel(gates_ref, x_ref, w_ref, b_ref, out_ref, *, d_half):
    n = pl.program_id(0)
    g = gates_ref[n]                       # per-node gate scalar (SMEM)

    # One fused MXU matmul for both branches (block-diagonal weights),
    # f32 accumulate, plus the packed bias row.
    y = jnp.dot(x_ref[0], w_ref[0], preferred_element_type=jnp.float32)
    y = y + b_ref[0]
    # y = [ mlp_preact | lin ] along the lane axis; each half is d_half wide
    # and d_half is a multiple of 128, so both halves are lane-aligned.
    mlp_pre = y[:, :d_half]
    lin = y[:, d_half:]

    mlp = jnp.maximum(mlp_pre, 0.0)        # ReLU
    gated = lin + g * (mlp - lin)          # = g*mlp + (1-g)*lin

    out = jnp.concatenate([gated, lin], axis=-1)   # [ gated | lin ], lane-aligned
    out_ref[0] = out.astype(out_ref.dtype)         # single lane-dense store


def treenode_level_forward(gate_values, x_mlp, x_lin, w_mlp, b_mlp, w_lin, b_lin):
    """Node-batched TreeNode forward (a whole tree level in one pallas_call).

    Shapes (leading N = number of nodes):
      gate_values: (N,)            x_mlp, x_lin: (N, B, In)
      w_mlp, w_lin: (N, In, D_out) (pre-transposed)      b_mlp, b_lin: (N, D_out)
    Returns (gated (N,B,D_out), lin (N,B,D_out), l0_reg (N,) zeros).
    """
    f32 = jnp.float32
    N, B, In = x_mlp.shape
    D_out = w_mlp.shape[-1]

    B_pad = _round_up(B, 8)            # sublane multiple
    D_pad = _round_up(D_out, 128)      # lane-aligned halves -> no cross-lane shuffles
    K = 2 * In

    gates = jnp.asarray(gate_values, f32).reshape(N)

    # Pack activations: [x_mlp | x_lin] along lanes; pad batch to sublane multiple.
    x_packed = jnp.concatenate([x_mlp.astype(f32), x_lin.astype(f32)], axis=-1)
    if B_pad != B:
        x_packed = jnp.pad(x_packed, ((0, 0), (0, B_pad - B), (0, 0)))

    # Block-diagonal weights so a single MXU matmul computes both branches.
    pad_d = D_pad - D_out
    w_mlp_p = jnp.pad(w_mlp.astype(f32), ((0, 0), (0, 0), (0, pad_d)))
    w_lin_p = jnp.pad(w_lin.astype(f32), ((0, 0), (0, 0), (0, pad_d)))
    zeros = jnp.zeros_like(w_mlp_p)
    w_blk = jnp.concatenate(
        [jnp.concatenate([w_mlp_p, zeros], axis=-1),
         jnp.concatenate([zeros, w_lin_p], axis=-1)],
        axis=1)                                            # (N, 2*In, 2*D_pad)

    b_mlp_p = jnp.pad(b_mlp.astype(f32).reshape(N, D_out), ((0, 0), (0, pad_d)))
    b_lin_p = jnp.pad(b_lin.astype(f32).reshape(N, D_out), ((0, 0), (0, pad_d)))
    b_packed = jnp.concatenate([b_mlp_p, b_lin_p], axis=-1).reshape(N, 1, 2 * D_pad)

    # Explicit VMEM budget: double-buffered per-node blocks + margin (keeps us
    # honest on v7x's 64 MiB physical / 32 MiB default scoped VMEM as shapes grow).
    block_bytes = 4 * (B_pad * K + K * 2 * D_pad + 2 * D_pad + B_pad * 2 * D_pad)
    vmem_limit = min(max(4 << 20, 2 * block_bytes + (1 << 20)), 64 << 20)

    kernel = functools.partial(_treenode_level_kernel, d_half=D_pad)

    out_packed = pl.pallas_call(
        kernel,
        out_shape=jax.ShapeDtypeStruct((N, B_pad, 2 * D_pad), f32),
        grid_spec=pltpu.PrefetchScalarGridSpec(
            num_scalar_prefetch=0,
            grid=(N,),
            in_specs=[
                pl.BlockSpec(memory_space=pltpu.SMEM),              # gates (N,)
                pl.BlockSpec((1, B_pad, K), lambda n: (n, 0, 0)),   # packed x
                pl.BlockSpec((1, K, 2 * D_pad), lambda n: (n, 0, 0)),   # block-diag W
                pl.BlockSpec((1, 1, 2 * D_pad), lambda n: (n, 0, 0)),   # packed bias
            ],
            out_specs=pl.BlockSpec((1, B_pad, 2 * D_pad), lambda n: (n, 0, 0)),
        ),
        compiler_params=pltpu.CompilerParams(
            dimension_semantics=("parallel",),   # shard nodes across TCs on v7x
            vmem_limit_bytes=vmem_limit,
        ),
    )(gates, x_packed, w_blk, b_packed)

    gated = out_packed[:, :B, :D_out]
    lin = out_packed[:, :B, D_pad:D_pad + D_out]
    l0_reg = jnp.zeros((N,), f32)        # DeterministicGate's l0 regularizer is 0
    return gated, lin, l0_reg


def treenode_forward(gate_value, x_mlp, x_lin, w_mlp, b_mlp, w_lin, b_lin):
    """Single-node forward matching TreeNode.forward. Returns (gated, lin, l0)."""
    gates = jnp.asarray(gate_value, jnp.float32).reshape(1)
    gated, lin, l0 = treenode_level_forward(
        gates,
        x_mlp[None], x_lin[None],
        w_mlp[None], jnp.asarray(b_mlp).reshape(1, -1),
        w_lin[None], jnp.asarray(b_lin).reshape(1, -1))
    return gated[0], lin[0], l0[0]


if __name__ == "__main__":
    key = jax.random.PRNGKey(0)
    ks = jax.random.split(key, 8)

    batch, input_dim, output_dim = 8, 32, 32
    gate_param = 0.75  # deterministic gate value

    # Deterministic synthetic params (nn.Linear-like); stored as [in, out].
    bound = 1.0 / float(jnp.sqrt(input_dim))
    w_mlp = jax.random.uniform(ks[0], (input_dim, output_dim), jnp.float32, -bound, bound)
    b_mlp = jax.random.uniform(ks[1], (output_dim,), jnp.float32, -bound, bound)
    w_lin = jax.random.uniform(ks[2], (input_dim, output_dim), jnp.float32, -bound, bound)
    b_lin = jax.random.uniform(ks[3], (output_dim,), jnp.float32, -bound, bound)
    x_mlp = jax.random.normal(ks[4], (batch, input_dim), jnp.float32)
    x_lin = jax.random.normal(ks[5], (batch, input_dim), jnp.float32)

    # --- single-node path (matches the PyTorch module forward) ---
    gated, lin, l0 = treenode_forward(gate_param, x_mlp, x_lin,
                                      w_mlp, b_mlp, w_lin, b_lin)
    jax.block_until_ready(gated)
    jax.block_until_ready(lin)

    ref_mlp = jnp.maximum(x_mlp @ w_mlp + b_mlp, 0.0)
    ref_lin = x_lin @ w_lin + b_lin
    ref_out = gate_param * ref_mlp + (1.0 - gate_param) * ref_lin
    assert jnp.allclose(gated, ref_out, atol=1e-4, rtol=1e-5)
    assert jnp.allclose(lin, ref_lin, atol=1e-4, rtol=1e-5)
    assert float(l0) == 0.0

    # --- node-batched path: a whole tree level (4 nodes) in one pallas_call ---
    n_nodes = 4
    kb = jax.random.split(ks[6], 7)
    gates = jax.random.uniform(kb[0], (n_nodes,), jnp.float32)
    W_mlp = jax.random.uniform(kb[1], (n_nodes, input_dim, output_dim), jnp.float32, -bound, bound)
    B_mlp = jax.random.uniform(kb[2], (n_nodes, output_dim), jnp.float32, -bound, bound)
    W_lin = jax.random.uniform(kb[3], (n_nodes, input_dim, output_dim), jnp.float32, -bound, bound)
    B_lin = jax.random.uniform(kb[4], (n_nodes, output_dim), jnp.float32, -bound, bound)
    X_mlp = jax.random.normal(kb[5], (n_nodes, batch, input_dim), jnp.float32)
    X_lin = jax.random.normal(kb[6], (n_nodes, batch, input_dim), jnp.float32)

    G, L, L0 = treenode_level_forward(gates, X_mlp, X_lin, W_mlp, B_mlp, W_lin, B_lin)
    jax.block_until_ready(G)
    jax.block_until_ready(L)

    ref_M = jnp.maximum(jnp.einsum("nbi,nio->nbo", X_mlp, W_mlp) + B_mlp[:, None, :], 0.0)
    ref_L = jnp.einsum("nbi,nio->nbo", X_lin, W_lin) + B_lin[:, None, :]
    ref_G = gates[:, None, None] * ref_M + (1.0 - gates[:, None, None]) * ref_L
    assert jnp.allclose(G, ref_G, atol=1e-4, rtol=1e-5)
    assert jnp.allclose(L, ref_L, atol=1e-4, rtol=1e-5)
    assert jnp.allclose(L0, jnp.zeros((n_nodes,), jnp.float32))

    print("KERNEL_OK")
</pallas_src>

<mosaic_0001>
module attributes {stable_mosaic.version = 11 : i64} {
  func.func @_treenode_level_kernel(%arg0: i32, %arg1: memref<1xf32, #tpu.memory_space<smem>>, %arg2: memref<1x8x64xf32, #tpu.memory_space<vmem>>, %arg3: memref<1x64x256xf32, #tpu.memory_space<vmem>>, %arg4: memref<1x1x256xf32, #tpu.memory_space<vmem>>, %arg5: memref<1x8x256xf32, #tpu.memory_space<vmem>>) attributes {dimension_semantics = [#tpu.dimension_semantics<parallel>], iteration_bounds = array<i64: 1>, scalar_prefetch = 0 : i64, scratch_operands = 0 : i64, tpu.core_type = #tpu.core_type<tc>, window_params = [{transform_indices = @transform_0, window_bounds = array<i64: 1>}, {transform_indices = @transform_1, window_bounds = array<i64: 1, 8, 64>}, {transform_indices = @transform_2, window_bounds = array<i64: 1, 64, 256>}, {transform_indices = @transform_3, window_bounds = array<i64: 1, 1, 256>}, {transform_indices = @transform_4, window_bounds = array<i64: 1, 8, 256>}]} {
    %0 = arith.index_cast %arg0 : i32 to index
    %1 = memref.load %arg1[%0] : memref<1xf32, #tpu.memory_space<smem>>
    %c0 = arith.constant 0 : index
    %c0_0 = arith.constant 0 : index
    %c0_1 = arith.constant 0 : index
    %2 = vector.load %arg2[%c0, %c0_0, %c0_1] : memref<1x8x64xf32, #tpu.memory_space<vmem>>, vector<1x8x64xf32>
    %3 = vector.shape_cast %2 : vector<1x8x64xf32> to vector<8x64xf32>
    %c0_2 = arith.constant 0 : index
    %c0_3 = arith.constant 0 : index
    %c0_4 = arith.constant 0 : index
    %4 = vector.load %arg3[%c0_2, %c0_3, %c0_4] : memref<1x64x256xf32, #tpu.memory_space<vmem>>, vector<1x64x256xf32>
    %5 = vector.shape_cast %4 : vector<1x64x256xf32> to vector<64x256xf32>
    %cst = arith.constant dense<0.000000e+00> : vector<8x256xf32>
    %6 = tpu.matmul %3, %5, %cst {dimension_numbers = #tpu.dot_dimension_numbers<[1], [0], [0], [1], [0, 0, 1, 1], [], []>} : vector<8x64xf32>, vector<64x256xf32>, vector<8x256xf32> -> vector<8x256xf32>
    %c0_5 = arith.constant 0 : index
    %c0_6 = arith.constant 0 : index
    %c0_7 = arith.constant 0 : index
    %7 = vector.load %arg4[%c0_5, %c0_6, %c0_7] : memref<1x1x256xf32, #tpu.memory_space<vmem>>, vector<1x1x256xf32>
    %8 = vector.shape_cast %7 : vector<1x1x256xf32> to vector<1x256xf32>
    %9 = vector.broadcast %8 : vector<1x256xf32> to vector<8x256xf32>
    %10 = arith.addf %6, %9 : vector<8x256xf32>
    %11 = vector.extract_strided_slice %10 {offsets = [0, 0], sizes = [8, 128], strides = [1, 1]} : vector<8x256xf32> to vector<8x128xf32>
    %12 = vector.extract_strided_slice %10 {offsets = [0, 128], sizes = [8, 128], strides = [1, 1]} : vector<8x256xf32> to vector<8x128xf32>
    %cst_8 = arith.constant 0.000000e+00 : f32
    %13 = vector.broadcast %cst_8 : f32 to vector<8x128xf32>
    %14 = arith.maximumf %11, %13 : vector<8x128xf32>
    %15 = arith.subf %14, %12 : vector<8x128xf32>
    %16 = vector.broadcast %1 : f32 to vector<8x128xf32>
    %17 = arith.mulf %16, %15 : vector<8x128xf32>
    %18 = arith.addf %12, %17 : vector<8x128xf32>
    %19 = tpu.concatenate %18, %12 in 1 : vector<8x128xf32>, vector<8x128xf32> -> vector<8x256xf32>
    %c0_9 = arith.constant 0 : index
    %c0_10 = arith.constant 0 : index
    %c0_11 = arith.constant 0 : index
    %20 = vector.load %arg5[%c0_9, %c0_10, %c0_11] : memref<1x8x256xf32, #tpu.memory_space<vmem>>, vector<1x8x256xf32>
    %21 = vector.shape_cast %20 : vector<1x8x256xf32> to vector<8x256xf32>
    %22 = vector.shape_cast %19 : vector<8x256xf32> to vector<1x8x256xf32>
    tpu.vector_store %arg5[%c0_9, %c0_10, %c0_11], %22 {strides = array<i32>} : memref<1x8x256xf32, #tpu.memory_space<vmem>>, vector<1x8x256xf32>,
    return
  }
  func.func @transform_0(%arg0: i32) -> i32 {
    %c0_i32 = arith.constant 0 : i32
    %c0_i32_0 = arith.constant 0 : i32
    return %c0_i32 : i32
  }
  func.func @transform_1(%arg0: i32) -> (i32, i32, i32) {
    %c0_i32 = arith.constant 0 : i32
    %c0_i32_0 = arith.constant 0 : i32
    %c0_i32_1 = arith.constant 0 : i32
    return %arg0, %c0_i32, %c0_i32_0 : i32, i32, i32
  }
  func.func @transform_2(%arg0: i32) -> (i32, i32, i32) {
    %c0_i32 = arith.constant 0 : i32
    %c0_i32_0 = arith.constant 0 : i32
    %c0_i32_1 = arith.constant 0 : i32
    return %arg0, %c0_i32, %c0_i32_0 : i32, i32, i32
  }
  func.func @transform_3(%arg0: i32) -> (i32, i32, i32) {
    %c0_i32 = arith.constant 0 : i32
    %c0_i32_0 = arith.constant 0 : i32
    %c0_i32_1 = arith.constant 0 : i32
    return %arg0, %c0_i32, %c0_i32_0 : i32, i32, i32
  }
  func.func @transform_4(%arg0: i32) -> (i32, i32, i32) {
    %c0_i32 = arith.constant 0 : i32
    %c0_i32_0 = arith.constant 0 : i32
    %c0_i32_1 = arith.constant 0 : i32
    return %arg0, %c0_i32, %c0_i32_0 : i32, i32, i32
  }
}

</mosaic_0001>

<bundles_post_ra>
// kernel: tpu_custom_call.1
= control target key start
LH: loop header
LB: loop body
LE: loop exit
PB: predicated region body
PF: predicated region fallthrough
CT: control target
= control target key end

     0   :  { %10 = vsyncpa [#allocation4], 0  ;;  %s292_s0 = inlined_call_operand.<no memory space> [shape: f32[1], index: 0, kind: input, shape index: {}]   ;;  %s293_s1 = inlined_call_operand.hbm [shape: f32[1,8,64], index: 1, kind: input, shape index: {}]   ;;  %s294_s2 = inlined_call_operand.hbm [shape: f32[1,64,256], index: 2, kind: input, shape index: {}]   ;;  %s295_s3 = inlined_call_operand.vmem [shape: f32[1,1,256], index: 3, kind: input, shape index: {}]   ;;  %s296_s4 = inlined_call_operand.hbm [shape: f32[1,8,256], index: 4, kind: output, shape index: {}]  }
   0x1   :  { %11 = vsyncpa [#allocation7], 0 }
   0x2   :  { %12 = vsyncpa [#allocation5], 0  ;;  %s246_s15 = smov [#allocation3]   ;;  %s247_s17 = smov [#allocation6]  }
   0x3   :  { %s21_s16 = sshll.u32 %s246_s15, 4  ;;  %s30_s18 = sshll.u32 %s247_s17, 4  ;;  %s22_s16 = int_to_ptr.vmem [resolvable:$true] %s21_s16  ;;  %s31_s18 = int_to_ptr.vmem [resolvable:$true] %s30_s18 }
   0x4   :  { %s188_s19 = scalar_lea.vmem %s22_s16, 128  ;;  %p193_p1 = scmp.lt.s32.totalorder %s22_s16, %s22_s16 }
   0x5   :  { %p189_p0 = scmp.ne.s32.totalorder %s22_s16, %s188_s19  ;;  %p194_p2 = scmp.lt.s32.totalorder %s188_s19, %s188_s19 }
   0x7   :  { %p195_p3 = por %p194_p2, %p193_p1 }
   0x9   :  { %p196_p4 = pnand %p195_p3, %p189_p0 }
   0xb   :  { %199 = shalt.err (!%p196_p4)
}
   0xc   :  { %24 = dma.hbm_to_vmem [thread:$0]  %s293_s1, 128, %s22_s16, [#allocation4]  }
   0xd   :  { %s208_s22 = scalar_lea.vmem %s31_s18, 2048  ;;  %p213_p6 = scmp.lt.s32.totalorder %s31_s18, %s31_s18 }
   0xe   :  { %p209_p5 = scmp.ne.s32.totalorder %s31_s18, %s208_s22  ;;  %p214_p7 = scmp.lt.s32.totalorder %s208_s22, %s208_s22 }
  0x10   :  { %p215_p8 = por %p214_p7, %p213_p6 }
  0x12   :  { %p216_p9 = pnand %p215_p8, %p209_p5 }
  0x14   :  { %219 = shalt.err (!%p216_p9)
}
  0x15   :  { %s248_s23 = smov 256   ;;  %s249_s24 = smov 16  }
  0x16   :  { %36 = dma.hbm_to_vmem [thread:$0]  %s294_s2, 2048, %s31_s18, [#allocation7], %s248_s23, %s248_s23, %s249_s24  }
  0x17   :  { %240 = dma.done.wait [#allocation4], 128  }
  0x18   :  { %241 = vsyncadd [#allocation4], 4294967168 }
  0x19   :  { %242 = dma.done.wait [#allocation7], 2048  }
  0x1a   :  { %243 = vsyncadd [#allocation7], 4294965248  ;;  %v250_v0 = vmov 0.0   ;;  %v62_v1 = vld [vmem:[#allocation6 + $0x78] sm:$0xff]  ;;  %v61_v2 = vld [vmem:[#allocation6 + $0x70] sm:$0xff]  ;;  %vm75_vm0 = vcmask 523264   ;;  %v65_v18 = vlaneseq  ;;  %v152_v30 = vstv %s292_s0 }
  0x1b   :  { %143 = vmatprep.mubr.f32.mxu0 %v250_v0  ;;  %v60_v3 = vld [vmem:[#allocation6 + $0x68] sm:$0xff]  ;;  %95 = vmatprep.subr.mxu0 %v62_v1  ;;  %v59_v4 = vld [vmem:[#allocation6 + $0x60] sm:$0xff]  ;;  %v58_v5 = vld [vmem:[#allocation6 + $0x58] sm:$0xff]  ;;  %s251_s29 = smov [#allocation8]  }
  0x1c   :  { %96 = vmatpush1.msra.mxu0 %v61_v2  ;;  %v57_v6 = vld [vmem:[#allocation6 + $0x50] sm:$0xff]  ;;  %v56_v7 = vld [vmem:[#allocation6 + $0x48] sm:$0xff]  ;;  %v55_v8 = vld [vmem:[#allocation6 + $0x40] sm:$0xff]  ;;  %v66_v19 = vshrl.u32 %v65_v18, 7  ;;  %s163_s30 = sshll.u32 %s251_s29, 4  ;;  %s164_s30 = int_to_ptr.vmem [resolvable:$true] %s163_s30 }
  0x1d   :  { %97 = vmatprep.subr.mxu0 %v60_v3  ;;  %v54_v9 = vld [vmem:[#allocation6 + $0x38] sm:$0xff]  ;;  %v53_v10 = vld [vmem:[#allocation6 + $0x30] sm:$0xff]  ;;  %v52_v11 = vld [vmem:[#allocation6 + $0x28] sm:$0xff]  ;;  %p225_p11 = scmp.lt.s32.totalorder %s164_s30, %s164_s30 }
  0x1e   :  { %98 = vmatpush1.msra.mxu0 %v59_v4  ;;  %v51_v12 = vld [vmem:[#allocation6 + $0x20] sm:$0xff]  ;;  %v50_v13 = vld [vmem:[#allocation6 + $0x18] sm:$0xff]  ;;  %v49_v14 = vld [vmem:[#allocation6 + $0x10] sm:$0xff]  ;;  %v67_v20 = vsub.s32 0, %v66_v19  ;;  %v71_v22 = vsub.s32 1, %v66_v19 }
  0x1f   :  { %99 = vmatprep.subr.mxu0 %v58_v5  ;;  %v48_v15 = vld [vmem:[#allocation6 + $0x8] sm:$0xff]  ;;  %v47_v16 = vld [vmem:[#allocation6] sm:$0xff]  ;;  %v46_v17 = vld [vmem:[#allocation3] sm:$0xff] }
  0x20   :  { %100 = vmatpush1.msra.mxu0 %v57_v6  ;;  %v63_v21 = vld [vmem:[%s295_s3] sm:$0x3]  ;;  %s220_s3 = scalar_lea.vmem %s164_s30, 256 }
  0x21   :  { %101 = vmatprep.subr.mxu0 %v56_v7  ;;  %v68_v23 = vrot.slane %v63_v21, %v67_v20  ;;  %v72_v24 = vrot.slane %v63_v21, %v71_v22  ;;  %p221_p10 = scmp.ne.s32.totalorder %s164_s30, %s220_s3  ;;  %p226_p12 = scmp.lt.s32.totalorder %s220_s3, %s220_s3 }
  0x22   :  { %102 = vmatpush1.msra.mxu0 %v55_v8 }
  0x23   :  { %103 = vmatprep.subr.mxu0 %v54_v9  ;;  %p227_p13 = por %p226_p12, %p225_p11 }
  0x24   :  { %104 = vmatpush1.msra.mxu0 %v53_v10 }
  0x25   :  { %105 = vmatprep.subr.mxu0 %v52_v11  ;;  %p228_p0 = pnand %p227_p13, %p221_p10 }
  0x26   :  { %106 = vmatpush1.msra.mxu0 %v51_v12 }
  0x27   :  { %107 = vmatprep.subr.mxu0 %v50_v13 }
  0x28   :  { %108 = vmatpush1.msra.mxu0 %v49_v14 }
  0x29   :  { %109 = vmatprep.subr.mxu0 %v48_v15 }
  0x2a   :  { %110 = vmatpush1.msra.mxu0 %v47_v16 }
  0x2b   :  { %173 = vmatmul.mubr.msk.f32.vlgmr.msra.gmra.mxu0 %vm75_vm0, %v46_v17 }
  0xeb   :  { %v145_v25 = vpop.f32.mrf.mxu0 }
  0xec   :  { %v146_v26 = vadd.f32 %v145_v25, %v68_v23 }
  0xed   :  { %v147_v27 = vpop.f32.mrf.mxu0 }
  0xee   :  { %v150_v28 = vmax.f32 %v146_v26, 0.0  ;;  %v148_v29 = vadd.f32 %v147_v27, %v72_v24 }
  0xf0   :  { %v151_v31 = vsub.f32 %v150_v28, %v148_v29  ;;  %156 = vst [vmem:[#allocation8 + $0x8] sm:$0xff] %v148_v29 }
  0xf2   :  { %v153_v32 = vmul.f32 %v152_v30, %v151_v31 }
  0xf4   :  { %v154_v33 = vadd.f32 %v153_v32, %v148_v29 }
  0xf6   :  { %155 = vst [vmem:[#allocation8] sm:$0xff] %v154_v33 }
  0xf7   :  { %231 = shalt.err (!%p228_p0)
}
  0xf8   :  { %166 = dma.vmem_to_hbm [thread:$0]  %s164_s30, 256, %s296_s4, [#allocation5]  }
  0xf9   :  { %244 = dma.done.wait [#allocation5], 256  }
  0xfa   :  { %245 = vsyncadd [#allocation5], 4294967040 }
  0xfb   :  { %170 = vsyncpa [#allocation4], 1 }
  0xfc   :  { %171 = vsyncpa [#allocation7], 1 }
  0xfd   :  { %172 = vsyncpa [#allocation5], 1 }

</bundles_post_ra>
